<compile_context>
chip_gen: v5e
topology: v5e:2x2
jax: 0.10.0
libtpu: 0.0.40
codegen_flags: <defaults>
</compile_context>

<pallas_src>
import functools
import math

import jax
import jax.numpy as jnp
from jax.experimental import pallas as pl
from jax.experimental.pallas import tpu as pltpu


# ~6 MiB per x / out block: per-grid-step fixed cost is ~0.35 us, so larger
# blocks amortize it (measured roofline fraction plateaus near ~85-86% for
# 512-1024-wide f32 tiles).  Budget: 3 arrays x 2 buffers x 6 MiB ~= 36 MiB.
_TARGET_BLOCK_BYTES = 6 * 1024 * 1024
_VMEM_LIMIT_BYTES = 48 * 1024 * 1024


def build_positional_encoding(max_seq_len: int, embed_dim: int) -> jnp.ndarray:
    """Reproduce the PyTorch __init__ pe buffer exactly (float32).

    pe[p, c] = sin(p / 10000**(2c/d)) for even c, cos(p / 10000**(2c/d)) for
    odd c (raw column index in the exponent, matching the module's loop).
    """
    pos = jnp.arange(max_seq_len, dtype=jnp.float32)[:, None]      # (S, 1)
    col = jnp.arange(embed_dim, dtype=jnp.float32)[None, :]        # (1, D)
    denom = jnp.power(10000.0, 2.0 * col / float(embed_dim))       # (1, D)
    angles = pos / denom                                           # (S, D)
    even_mask = (jnp.arange(embed_dim) % 2) == 0                   # (D,)
    pe = jnp.where(even_mask[None, :], jnp.sin(angles), jnp.cos(angles))
    return pe.astype(jnp.float32)                                  # (S, D)


def _sublane(dtype) -> int:
    """Sublane row packing: 8 for 4-byte, 16 for 2-byte, 32 for 1-byte dtypes."""
    return max(8, 32 // jnp.dtype(dtype).itemsize)


def _pos_embed_kernel(x_ref, pe_ref, o_ref, *, scale):
    # Sequence-tiled path: x/o (ts, D),      pe (ts, D)
    # Batch-widened path:  x/o (tb, S, D),   pe (S, D)  -> broadcast over batch
    # Fallback fused path: x/o (B, t),       pe (1, t)  -> jnp broadcast
    x = x_ref[...].astype(jnp.float32)
    pe = pe_ref[...].astype(jnp.float32)
    if x.ndim == pe.ndim + 1:
        pe = pe[None]
    o_ref[...] = (x * scale + pe).astype(o_ref.dtype)


def _forward_lane_aligned(x, pe_table, scale, *, donate_x=False):
    """x: (B, S, D) with D % 128 == 0; pe_table: (rows >= S, D), same dtype class.

    Only the first ceil(S / tile) row-blocks of pe_table are ever read, so the
    caller can pass the full (max_seq_len, D) table without slicing.
    """
    B, S, D = x.shape
    pe_rows = pe_table.shape[0]
    itemsize = jnp.dtype(x.dtype).itemsize
    sub = _sublane(x.dtype)
    kernel = functools.partial(_pos_embed_kernel, scale=scale)
    aliases = {0: 0} if donate_x else {}

    def cparams(dims):
        return pltpu.CompilerParams(
            dimension_semantics=dims, vmem_limit_bytes=_VMEM_LIMIT_BYTES)

    slab_bytes = S * D * itemsize   # one batch element's full (S, D) slab

    if B > 1 and 2 * slab_bytes <= _TARGET_BLOCK_BYTES:
        # ---- small-S / many-batch regime: widen the block across batch ------
        # pe is a single resident block (constant block index -> DMA'd once).
        pe_in = pe_table if (S % sub == 0 or S == pe_rows) else pe_table[:S]
        tb = max(1, min(B, _TARGET_BLOCK_BYTES // slab_bytes))
        if pl.cdiv(B, tb) < 2:
            tb = pl.cdiv(B, 2)      # keep >=2 parallel steps for v7x's 2 TCs
        grid = (pl.cdiv(B, tb),)
        return pl.pallas_call(
            kernel,
            out_shape=jax.ShapeDtypeStruct((B, S, D), x.dtype),
            grid_spec=pltpu.PrefetchScalarGridSpec(
                num_scalar_prefetch=0,
                grid=grid,
                in_specs=[
                    pl.BlockSpec((tb, S, D), lambda i: (i, 0, 0)),
                    pl.BlockSpec((S, D), lambda i: (0, 0)),
                ],
                out_specs=pl.BlockSpec((tb, S, D), lambda i: (i, 0, 0)),
            ),
            compiler_params=cparams(("parallel",)),
            input_output_aliases=aliases,
        )(x, pe_in)

    # ---- long-sequence regime: tile S (outer) x batch (inner) ---------------
    # pe's index_map ignores b, so its DMA is skipped on consecutive steps
    # with the same S-tile (batch is the inner grid axis).
    max_rows = max(_TARGET_BLOCK_BYTES // (D * itemsize), sub)
    pe_in = pe_table
    if S <= max_rows:
        ts = S
        if S % sub != 0 and S != pe_rows:
            pe_in = pe_table[:S]    # rare unaligned-S case; tiny wrapper slice
    else:
        cap = (max_rows // sub) * sub
        ts = cap
        for cand in range(cap, 0, -sub):   # prefer a tile dividing S (no tail)
            if S % cand == 0:
                ts = cand
                break
    grid = (pl.cdiv(S, ts), B)
    return pl.pallas_call(
        kernel,
        out_shape=jax.ShapeDtypeStruct((B, S, D), x.dtype),
        grid_spec=pltpu.PrefetchScalarGridSpec(
            num_scalar_prefetch=0,
            grid=grid,
            in_specs=[
                # leading batch dim squeezed -> kernel sees (ts, D)
                pl.BlockSpec((None, ts, D), lambda s, b: (b, s, 0)),
                pl.BlockSpec((ts, D), lambda s, b: (s, 0)),
            ],
            out_specs=pl.BlockSpec((None, ts, D), lambda s, b: (b, s, 0)),
        ),
        compiler_params=cparams(("parallel", "parallel")),
        input_output_aliases=aliases,
    )(x, pe_in)


def positional_embedding_forward(x: jnp.ndarray,
                                 pe_full: jnp.ndarray,
                                 *,
                                 donate_x: bool = False) -> jnp.ndarray:
    """x: (B, S, D); pe_full: (max_seq_len, D) float32."""
    B, S, D = x.shape
    max_seq_len, d_pe = pe_full.shape
    if d_pe != D:
        raise ValueError(f"embed_dim mismatch: x has {D}, pe has {d_pe}")
    if S > max_seq_len:
        raise ValueError(f"seq_len {S} exceeds precomputed max_seq_len {max_seq_len}")

    scale = math.sqrt(float(D))

    # Carry pe in x's dtype for sub-32-bit float inputs: halves pe HBM traffic
    # and VMEM; f32 in-kernel compute keeps the extra rounding at output level.
    if (jnp.issubdtype(x.dtype, jnp.floating)
            and jnp.dtype(x.dtype).itemsize < jnp.dtype(pe_full.dtype).itemsize):
        pe_src = pe_full.astype(x.dtype)
    else:
        pe_src = pe_full

    if D % 128 == 0:
        return _forward_lane_aligned(x, pe_src, scale, donate_x=donate_x)

    F = S * D
    if F % 128 == 0:
        # Narrow / unaligned D: fold sequence rows into lanes so stores are
        # full (8,128) tiles, then reuse the lane-aligned path.  The first
        # S*D/128 rows of the folded pe are exactly pe[:S] flattened.
        L = F // 128
        x3 = x.reshape(B, L, 128)
        if (max_seq_len * D) % 128 == 0:
            pe3 = pe_src.reshape(-1, 128)
        else:
            pe3 = pe_src[:S].reshape(L, 128)
        # TODO(synk): plumb donation through the reshape once callers actually
        # donate x (aliasing through a reshape may be silently dropped by XLA).
        out3 = _forward_lane_aligned(x3, pe3, scale, donate_x=False)
        return out3.reshape(B, S, D)

    # ---- fallback for shapes where neither D nor S*D is lane-aligned --------
    x2 = x.reshape(B, F)
    pe2 = pe_src[:S].reshape(1, F)
    itemsize = jnp.dtype(x.dtype).itemsize
    kernel = functools.partial(_pos_embed_kernel, scale=scale)
    # budget against the padded-sublane size (B < 8 pads to 8 rows in VMEM)
    max_cols = max(_TARGET_BLOCK_BYTES // (max(B, 8) * itemsize), 128)
    t = F if F <= max_cols else (max_cols // 128) * 128
    grid = (pl.cdiv(F, t),)
    out2 = pl.pallas_call(
        kernel,
        out_shape=jax.ShapeDtypeStruct((B, F), x.dtype),
        grid_spec=pltpu.PrefetchScalarGridSpec(
            num_scalar_prefetch=0,
            grid=grid,
            in_specs=[
                pl.BlockSpec((B, t), lambda i: (0, i)),
                pl.BlockSpec((1, t), lambda i: (0, i)),
            ],
            out_specs=pl.BlockSpec((B, t), lambda i: (0, i)),
        ),
        compiler_params=pltpu.CompilerParams(
            dimension_semantics=("parallel",),
            vmem_limit_bytes=_VMEM_LIMIT_BYTES,
        ),
    )(x2, pe2)
    return out2.reshape(B, S, D)


if __name__ == "__main__":
    key = jax.random.PRNGKey(0)
    k1, k2, k3 = jax.random.split(key, 3)

    # --- Case 1: narrow embed dim (lane-fold path), module-like shapes -------
    B, S, D = 2, 8, 32
    MAX_SEQ_LEN = 16
    x = jax.random.normal(k1, (B, S, D), dtype=jnp.float32)
    pe_full = build_positional_encoding(MAX_SEQ_LEN, D)

    out = jax.block_until_ready(positional_embedding_forward(x, pe_full))
    ref = x * math.sqrt(D) + pe_full[None, :S, :]
    assert out.shape == (B, S, D)
    assert jnp.allclose(out, ref, atol=1e-5, rtol=1e-5)

    # --- Case 2: lane-aligned embed dim, small-S / multi-batch (widened path) -
    B2, S2, D2 = 2, 16, 128
    MAX_SEQ_LEN2 = 32
    x2 = jax.random.normal(k2, (B2, S2, D2), dtype=jnp.float32)
    pe_full2 = build_positional_encoding(MAX_SEQ_LEN2, D2)

    out2 = jax.block_until_ready(positional_embedding_forward(x2, pe_full2))
    ref2 = x2 * math.sqrt(D2) + pe_full2[None, :S2, :]
    assert out2.shape == (B2, S2, D2)
    assert jnp.allclose(out2, ref2, atol=1e-5, rtol=1e-5)

    # --- Case 3: bf16 input, B=1 (sequence-tiled path + pe dtype matching) ---
    B3, S3, D3 = 1, 64, 128
    MAX_SEQ_LEN3 = 64
    x3 = jax.random.normal(k3, (B3, S3, D3), dtype=jnp.bfloat16)
    pe_full3 = build_positional_encoding(MAX_SEQ_LEN3, D3)

    out3 = jax.block_until_ready(positional_embedding_forward(x3, pe_full3))
    ref3 = x3.astype(jnp.float32) * math.sqrt(D3) + pe_full3[None, :S3, :]
    assert out3.shape == (B3, S3, D3)
    assert jnp.allclose(out3.astype(jnp.float32), ref3, atol=0.05, rtol=0.02)

    print("KERNEL_OK")
</pallas_src>

<mosaic_0001>
module attributes {stable_mosaic.version = 11 : i64} {
  func.func @_pos_embed_kernel(%arg0: i32, %arg1: memref<1x2x128xf32, #tpu.memory_space<vmem>>, %arg2: memref<2x128xf32, #tpu.memory_space<vmem>>, %arg3: memref<1x2x128xf32, #tpu.memory_space<vmem>>) attributes {dimension_semantics = [#tpu.dimension_semantics<parallel>], iteration_bounds = array<i64: 2>, scalar_prefetch = 0 : i64, scratch_operands = 0 : i64, tpu.core_type = #tpu.core_type<tc>, window_params = [{transform_indices = @transform_0, window_bounds = array<i64: 1, 2, 128>}, {pipeline_mode = #tpu.pipeline_mode<synchronous>, transform_indices = @transform_1, window_bounds = array<i64: 2, 128>}, {transform_indices = @transform_2, window_bounds = array<i64: 1, 2, 128>}]} {
    %c0 = arith.constant 0 : index
    %c0_0 = arith.constant 0 : index
    %c0_1 = arith.constant 0 : index
    %0 = vector.load %arg1[%c0, %c0_0, %c0_1] : memref<1x2x128xf32, #tpu.memory_space<vmem>>, vector<1x2x128xf32>
    %c0_2 = arith.constant 0 : index
    %c0_3 = arith.constant 0 : index
    %1 = vector.load %arg2[%c0_2, %c0_3] : memref<2x128xf32, #tpu.memory_space<vmem>>, vector<2x128xf32>
    %2 = vector.shape_cast %1 : vector<2x128xf32> to vector<1x2x128xf32>
    %cst = arith.constant 5.65685415 : f32
    %3 = vector.broadcast %cst : f32 to vector<1x2x128xf32>
    %4 = arith.mulf %0, %3 : vector<1x2x128xf32>
    %5 = arith.addf %4, %2 : vector<1x2x128xf32>
    %c0_4 = arith.constant 0 : index
    %c0_5 = arith.constant 0 : index
    %c0_6 = arith.constant 0 : index
    %6 = vector.load %arg3[%c0_4, %c0_5, %c0_6] : memref<1x2x128xf32, #tpu.memory_space<vmem>>, vector<1x2x128xf32>
    tpu.vector_store %arg3[%c0_4, %c0_5, %c0_6], %5 {strides = array<i32>} : memref<1x2x128xf32, #tpu.memory_space<vmem>>, vector<1x2x128xf32>,
    return
  }
  func.func @transform_0(%arg0: i32) -> (i32, i32, i32) {
    %c0_i32 = arith.constant 0 : i32
    %c0_i32_0 = arith.constant 0 : i32
    %c0_i32_1 = arith.constant 0 : i32
    return %arg0, %c0_i32, %c0_i32_0 : i32, i32, i32
  }
  func.func @transform_1(%arg0: i32) -> (i32, i32) {
    %c0_i32 = arith.constant 0 : i32
    %c0_i32_0 = arith.constant 0 : i32
    %c0_i32_1 = arith.constant 0 : i32
    return %c0_i32, %c0_i32_0 : i32, i32
  }
  func.func @transform_2(%arg0: i32) -> (i32, i32, i32) {
    %c0_i32 = arith.constant 0 : i32
    %c0_i32_0 = arith.constant 0 : i32
    %c0_i32_1 = arith.constant 0 : i32
    return %arg0, %c0_i32, %c0_i32_0 : i32, i32, i32
  }
}

</mosaic_0001>

<bundles_post_ra>
// kernel: tpu_custom_call.1
= control target key start
LH: loop header
LB: loop body
LE: loop exit
PB: predicated region body
PF: predicated region fallthrough
CT: control target
= control target key end

     0   :  { %7 = vsyncpa [#allocation3], 0  ;;  %s634_s0 = inlined_call_operand.hbm [shape: f32[2,2,128], index: 0, kind: input, shape index: {}]   ;;  %s635_s1 = inlined_call_operand.hbm [shape: f32[2,128], index: 1, kind: input, shape index: {}]   ;;  %s636_s2 = inlined_call_operand.hbm [shape: f32[2,2,128], index: 2, kind: output, shape index: {}]  }
   0x1   :  { %9 = vsyncpa [#allocation3 + $0x1], 0 }
   0x2   :  { %10 = vsyncpa [#allocation6], 0 }
   0x3   :  { %11 = vsyncpa [#allocation4], 0 }
   0x4   :  { %13 = vsyncpa [#allocation4 + $0x1], 0  ;;  %s496_s9 = smov 0   ;;  %s498_s10 = smov 0  }
   0x5   :  { %s500_s11 = smov 0   ;;  %s502_s12 = smov 0  }
   0x6 LB: > { %s517_s13 = sadd.s32 4294967295, %s478_s12   ;;  %s277_s14 = sadd.s32 4294967294, %s478_s12   ;;  %s478_s12 = sphi %s502_s12, %s646_s12   ;;  %s474_s11 = sphi %s500_s11, %s645_s11   ;;  %s470_s10 = sphi %s498_s10, %s644_s10   ;;  %s466_s9 = sphi %s496_s9, %s643_s9  }
   0x7   : > { %p39_p0 = scmp.ne.s32.totalorder %s470_s10, %s466_s9  ;;  %p40_p1 = scmp.eq.s32.totalorder %s517_s13, 0 }
   0x8   : > { %p84_p2 = scmp.eq.s32.totalorder %s517_s13, 1  ;;  %p90_p3 = scmp.eq.s32.totalorder %s277_s14, 1 }
   0x9   : > { %p526_p4 = por %p40_p1, %p39_p0  ;;  %p278_p5 = scmp.ge.s32.totalorder %s478_s12, 1 }
   0xa   : > { %p531_p6 = por %p90_p3, %p39_p0  ;;  %p97_p7 = scmp.lt.s32.totalorder %s478_s12, 3 }
   0xb   : > { %s109_s19 = sshll.u32 %s635_s1, 4  ;;  %s480_s21 = smov [#allocation5]   ;;  %s110_s19 = int_to_ptr.hbm [resolvable:$true] %s109_s19 }
   0xc   : > { %p539_p8 = pnand %p278_p5, %p97_p7  ;;  %s111_s22 = sshll.u32 %s480_s21, 4  ;;  %s112_s22 = int_to_ptr.vmem [resolvable:$true] %s111_s22 }
   0xd   : > { %s549_s23 = sadd.s32 1, %s478_s12   ;;  %s26_s24 = sadd.s32 1, %s474_s11 }
   0xe   : > { %p299_p10 = pneg %p539_p8  ;;  %s23_s25 = ssub.s32 %s478_s12, %s549_s23 }
   0xf   : > { %p24_p12 = scmp.eq.s32.totalorder %s23_s25, 0  ;;  %p33_p13 = scmp.ne.s32.totalorder %s474_s11, %s470_s10 }
  0x10   : > { %p300_p11 = pnand %p299_p10, %p40_p1  ;;  %p34_p0 = scmp.eq.s32.totalorder %s478_s12, 0 }
  0x11   : > { %s558_s26 = scalar_select %p24_p12, %s474_s11, %s26_s24  }
  0x12   : > { %302 = dma.hbm_to_vmem [thread:$0]  (!%p300_p11), %s110_s19, 32, %s112_s22, [#allocation6]  }
  0x13   : > { %p562_p3 = por %p84_p2, %p33_p13  ;;  %p312_p5 = scmp.lt.s32.totalorder %s478_s12, 2 }
  0x14   : > { %s122_s28 = sand.u32 1, %s474_s11   ;;  %s282_s29 = sshll.u32 %s478_s12, 1 }
  0x15   : > { %p35_p7 = por %p34_p0, %p33_p13  ;;  %s281_s30 = sshll.u32 %s122_s28, 1 }
  0x16   : > { %s130_s5 = scalar_lea.hbm %s634_s0, %s282_s29  ;;  %s126_s7 = scalar_lea.vmem [#allocation2], %s281_s30 }
  0x17   : > { %s132_s6 = sshll.u32 %s130_s5, 4  ;;  %s134_s8 = sshll.u32 %s126_s7, 4  ;;  %s133_s6 = int_to_ptr.hbm [resolvable:$true] %s132_s6  ;;  %s135_s8 = int_to_ptr.vmem [resolvable:$true] %s134_s8 }
  0x18   : > { %p572_p10 = pnand %p312_p5, %p35_p7  ;;  %s123_s17 = scalar_lea.sflag [#allocation3], %s122_s28 }
  0x19   : > { %s378_s18 = sshra.s32 %s133_s6, 4  ;;  %s385_s24 = scalar_lea.hbm %s634_s0, 4  ;;  %s379_s18 = int_to_ptr.hbm [resolvable:$true] %s378_s18 }
  0x1a   : > { %s380_s19 = scalar_lea.hbm %s379_s18, 2  ;;  %p382_p11 = pneg %p572_p10 }
  0x1b   : > { %p381_p2 = scmp.ne.s32.totalorder %s379_s18, %s380_s19  ;;  %p386_p0 = scmp.lt.s32.totalorder %s379_s18, %s634_s0 }
  0x1c   : > { %p387_p5 = scmp.lt.s32.totalorder %s385_s24, %s380_s19 }
  0x1d   : > { %p383_p12 = pnand %p382_p11, %p381_p2 }
  0x1e   : > { %p388_p7 = por %p387_p5, %p386_p0 }
  0x1f   : > { %p384_p13 = pneg %p383_p12 }
  0x21   : > { %p389_p9 = pnand %p388_p7, %p384_p13 }
  0x23   : > { %392 = shalt.err (!%p389_p9)
}
  0x24   : > { %306 = dma.hbm_to_vmem [thread:$0]  (!%p572_p10), %s133_s6, 32, %s135_s8, %s123_s17  }
  0x25   : > { %143 = sbr.rel (%p539_p8) target bundleno = 60 (0x3c), region = 28  ;;  %s589_s28 = sand.u32 (!%p539_p8), 1, %s470_s10  }
  0x26   : > { %s284_s30 = sshll.u32 (!%p539_p8), %s589_s28, 1  ;;  %s146_s3 = scalar_lea.sflag (!%p539_p8), [#allocation3], %s589_s28 }
  0x27   : > { %s149_s4 = scalar_lea.vmem (!%p539_p8), [#allocation2], %s284_s30 }
  0x2a   : > { %453 = dma.done.wait (%p526_p4), %s146_s3, 32  }
  0x2b   : > { %455 = vsyncadd (%p526_p4), %s146_s3, 4294967264 }
  0x2c   : > { %457 = dma.done.wait (%p40_p1), [#allocation6], 32  }
  0x2d   : > { %459 = vsyncadd (%p40_p1), [#allocation6], 4294967264  ;;  %s288_s20 = sshll.u32 %s517_s13, 1  ;;  %v176_v0 = vld [vmem:[%s149_s4] sm:$0x3]  ;;  %s175_s8 = scalar_lea.vmem [#allocation7], %s284_s30 }
  0x2e   : > { %s192_s7 = scalar_lea.hbm %s636_s2, %s288_s20  ;;  %v177_v1 = vld [vmem:[#allocation5] sm:$0x3]  ;;  %s194_s14 = sshll.u32 %s175_s8, 4  ;;  %v178_v2 = vmul.f32 5.656854, %v176_v0  ;;  %s195_s14 = int_to_ptr.vmem [resolvable:$true] %s194_s14 }
  0x2f   : > { %s196_s15 = sshll.u32 %s192_s7, 4  ;;  %s182_s17 = scalar_lea.sflag [#allocation4], %s589_s28  ;;  %s197_s15 = int_to_ptr.hbm [resolvable:$true] %s196_s15 }
  0x30   : > { %v179_v3 = vadd.f32 %v178_v2, %v177_v1  ;;  %s422_s18 = sshra.s32 %s197_s15, 4  ;;  %s428_s22 = scalar_lea.hbm %s636_s2, 4  ;;  %s423_s18 = int_to_ptr.hbm [resolvable:$true] %s422_s18 }
  0x31   : > { %s424_s19 = scalar_lea.hbm %s423_s18, 2  ;;  %p429_p9 = scmp.lt.s32.totalorder %s423_s18, %s636_s2 }
  0x32   : > { %180 = vst [vmem:[%s175_s8] sm:$0x3] %v179_v3  ;;  %p425_p1 = scmp.ne.s32.totalorder %s423_s18, %s424_s19  ;;  %p430_p10 = scmp.lt.s32.totalorder %s428_s22, %s424_s19 }
  0x34   : > { %p426_p4 = pnand %p425_p1, %p562_p3  ;;  %p431_p2 = por %p430_p10, %p429_p9 }
  0x36   : > { %p427_p8 = pneg %p426_p4 }
  0x38   : > { %p432_p11 = pnand %p431_p2, %p427_p8 }
  0x3a   : > { %435 = shalt.err (!%p432_p11)
}
  0x3b   : > { %297 = dma.vmem_to_hbm [thread:$0]  (%p562_p3), %s195_s14, 32, %s197_s15, %s182_s17  }
  0x3c PF: > { %s208_s29 = sand.u32 1, %s466_s9   ;;  %p642_p12 = scmp.ge.s32.totalorder %s478_s12, 2 }
  0x3d   : > { %s209_s28 = scalar_lea.sflag [#allocation4], %s208_s29 }
  0x3e   : > { %p308_p13 = pnand %p642_p12, %p531_p6 }
  0x40   : > { %p309_p0 = pneg %p308_p13 }
  0x42   : > { %461 = dma.done.wait (%p309_p0), %s209_s28, 32  }
  0x43   : > { %463 = vsyncadd (%p309_p0), %s209_s28, 4294967264  ;;  %p16_p5 = scmp.ge.s32.totalorder %s549_s23, 4   ;;  %s643_s9 = smov %s470_s10 }
  0x44   : > { %s644_s10 = smov %s474_s11  ;;  %s645_s11 = smov %s558_s26 }
  0x45   : > { %s646_s12 = smov %s549_s23  ;;  %18 = sbr.rel (!%p16_p5) target bundleno = 6 (0x6), region = 77 }
  0x4a   :  { %215 = vsyncpa [#allocation3], 1 }
  0x4b   :  { %217 = vsyncpa [#allocation3 + $0x1], 1 }
  0x4c   :  { %218 = vsyncpa [#allocation6], 1 }
  0x4d   :  { %219 = vsyncpa [#allocation4], 1 }
  0x4e   :  { %221 = vsyncpa [#allocation4 + $0x1], 1 }

</bundles_post_ra>
